<compile_context>
chip_gen: v5e
topology: v5e:2x2
jax: 0.10.0
libtpu: 0.0.40
codegen_flags: <defaults>
</compile_context>

<pallas_src>
import numpy as np
import jax
import jax.numpy as jnp
from jax.experimental import pallas as pl
from jax.experimental.pallas import tpu as pltpu


_LN_EPS = 1e-5       # PyTorch nn.LayerNorm default
_SIGMA_EPS = 0.1     # LatentMLP epsilon (assumed default)


def _softplus(x):
    # stable softplus (identical formula in kernel and reference)
    return jnp.maximum(x, 0.0) + jnp.log(1.0 + jnp.exp(-jnp.abs(x)))


def _layer_norm(x, gamma, beta, eps=_LN_EPS):
    mu = jnp.mean(x, axis=-1, keepdims=True)
    var = jnp.mean((x - mu) ** 2, axis=-1, keepdims=True)
    return (x - mu) * jax.lax.rsqrt(var + eps) * gamma + beta


def _act(x, act_fn):
    if act_fn == "gelu":
        return jax.nn.gelu(x, approximate=True)
    return jnp.maximum(x, 0.0)


def _make_decoder_kernel(n_layers, ln, act_fn, ts, dim_y, expand_v_in_kernel):
    L = n_layers - 1                     # hidden linear layers in LatentMLP
    assert L >= 1                        # TODO(synk): n_layers == 1 unsupported

    def kernel(x_ref, v_ref, r_ref, wxh_ref, wsq_ref, vec_ref,
               whead_ref, bhead_ref, out_ref):
        f32 = jnp.float32

        def bias(k):                     # (1, H) row from the packed vector slab
            return vec_ref[pl.ds(k, 1), :].astype(f32)

        x = x_ref[...].astype(f32)       # (TM, dim_x)
        r = r_ref[...].astype(f32)       # (TM, H)

        # v contribution of layer 1, computed at (G, H) then expanded in-register
        vt = v_ref[...].astype(f32)      # (G, H) or (TM, H) in fallback mode
        hv = jnp.dot(vt, wsq_ref[0].astype(f32), preferred_element_type=f32)
        if expand_v_in_kernel:
            G, H = vt.shape
            hv = jnp.broadcast_to(hv[:, None, :], (G, ts, H)).reshape(G * ts, H)

        # layer 1 (input projection folded into W_xh / b_fold outside the kernel)
        h = (jnp.dot(x, wxh_ref[...].astype(f32), preferred_element_type=f32)
             + jnp.dot(r, wsq_ref[1].astype(f32), preferred_element_type=f32)
             + hv + bias(0))
        vi = 1
        if ln:
            h = _layer_norm(h, bias(1), bias(2))
            vi = 3
        h = _act(h, act_fn)

        # deeper LatentMLP layers (static unroll)
        for l in range(L - 1):
            h = (jnp.dot(h, wsq_ref[2 + l].astype(f32), preferred_element_type=f32)
                 + bias(vi))
            vi += 1
            if ln:
                h = _layer_norm(h, bias(vi), bias(vi + 1))
                vi += 2
            h = _act(h, act_fn)

        # fused mu|sigma head: one matmul, one lane-dense output
        ph = (jnp.dot(h, whead_ref[...].astype(f32), preferred_element_type=f32)
              + bhead_ref[...].astype(f32))
        col = jax.lax.broadcasted_iota(jnp.int32, ph.shape, 1)
        sig = _SIGMA_EPS + (1.0 - _SIGMA_EPS) * _softplus(ph)
        out_ref[...] = jnp.where(col < dim_y, ph, sig).astype(out_ref.dtype)

    return kernel


def _choose_tile(N, unit, cap_rows=2048):
    """Row tile: multiple of `unit`, capped by a VMEM budget, >=2 tiles if splittable."""
    if N <= unit:
        return N                               # single tile covering everything
    cap = max(unit, (cap_rows // unit) * unit)
    half = (N + 1) // 2
    tm = ((half + unit - 1) // unit) * unit    # ensures >= 2 tiles (v7x megacore)
    return max(unit, min(cap, tm))


def mtp_decoder_forward(X, v, r, params, *, n_layers, act_fn="relu", ln=False):
    """X: (bs, nb, ts, dim_x); v: (bs, nb, H); r: (bs, nb, ts, H).
    Returns (mu, sigma), each (bs, nb, ts, dim_y), float32."""
    bs, nb, ts, dim_x = X.shape
    H = params["wp"].shape[1]
    dim_y = params["wmu"].shape[1]
    L = n_layers - 1
    assert L >= 1
    layers = params["layers"]
    assert len(layers) == L

    N = bs * nb * ts
    BN = bs * nb
    f32 = jnp.float32
    pdt = params["wp"].dtype
    hi = jax.lax.Precision.HIGHEST

    # ---- fold the input projection into layer 1 (exact affine composition) ----
    w1 = layers[0]["w"].astype(f32)                 # (3H, H): rows = [w | v | r]
    w1w, w1v, w1r = w1[:H], w1[H:2 * H], w1[2 * H:]
    w_xh = jnp.dot(params["wp"].astype(f32), w1w, precision=hi)            # (dim_x, H)
    b_fold = (jnp.dot(params["bp"].astype(f32) + params["emb"].astype(f32),
                      w1w, precision=hi)
              + layers[0]["b"].astype(f32))                                 # (1, H)

    # ---- pack the small parameters into a few slabs ----
    w_sq = jnp.stack([w1v, w1r] + [lp["w"].astype(f32) for lp in layers[1:]],
                     axis=0).astype(pdt)                                    # (L+1, H, H)
    vec_rows = [b_fold]
    if ln:
        vec_rows += [layers[0]["g"].astype(f32), layers[0]["be"].astype(f32)]
    for lp in layers[1:]:
        vec_rows.append(lp["b"].astype(f32))
        if ln:
            vec_rows += [lp["g"].astype(f32), lp["be"].astype(f32)]
    vec_slab = jnp.concatenate(vec_rows, axis=0).astype(pdt)                # (n_vec, H)
    n_vec = vec_slab.shape[0]

    w_head = jnp.concatenate([params["wmu"].astype(f32),
                              params["wsig"].astype(f32)], axis=1).astype(pdt)  # (H, 2*dim_y)
    b_head = jnp.concatenate([params["bmu"].astype(f32),
                              params["bsig"].astype(f32)], axis=1).astype(pdt)  # (1, 2*dim_y)

    # ---- activations: collapse the whole batch into the matmul M axis ----
    x2 = X.reshape(N, dim_x)
    r2 = r.reshape(N, H)

    expand_v_in_kernel = (ts % 8 == 0)
    if expand_v_in_kernel:
        v2 = v.reshape(BN, H)                       # no HBM-materialized broadcast
        unit = 8 * ts                               # TM%ts==0 and (TM//ts)%8==0
    else:
        # TODO(synk): fallback materializes the v broadcast (one extra (N,H) round trip)
        v2 = jnp.broadcast_to(v[:, :, None, :], (bs, nb, ts, H)).reshape(N, H)
        unit = 8

    TM = _choose_tile(N, unit)
    grid = (pl.cdiv(N, TM),)                        # no padding; ragged tail is fine

    if expand_v_in_kernel:
        G = TM // ts
        v_spec = pl.BlockSpec((G, H), lambda i: (i, 0))
    else:
        v_spec = pl.BlockSpec((TM, H), lambda i: (i, 0))

    in_specs = [
        pl.BlockSpec((TM, dim_x), lambda i: (i, 0)),            # x rows
        v_spec,                                                  # v (per-task rows)
        pl.BlockSpec((TM, H), lambda i: (i, 0)),                 # r rows
        pl.BlockSpec((dim_x, H), lambda i: (0, 0)),              # folded W_xh
        pl.BlockSpec((L + 1, H, H), lambda i: (0, 0, 0)),        # square weight slab
        pl.BlockSpec((n_vec, H), lambda i: (0, 0)),              # bias / LN slab
        pl.BlockSpec((H, 2 * dim_y), lambda i: (0, 0)),          # fused head weight
        pl.BlockSpec((1, 2 * dim_y), lambda i: (0, 0)),          # fused head bias
    ]
    out_spec = pl.BlockSpec((TM, 2 * dim_y), lambda i: (i, 0))

    kernel = _make_decoder_kernel(n_layers, ln, act_fn, ts, dim_y, expand_v_in_kernel)
    out = pl.pallas_call(
        kernel,
        out_shape=jax.ShapeDtypeStruct((N, 2 * dim_y), jnp.float32),
        grid=grid,
        in_specs=in_specs,
        out_specs=out_spec,
        compiler_params=pltpu.CompilerParams(
            dimension_semantics=("parallel",),        # independent row tiles
            vmem_limit_bytes=32 * 1024 * 1024),       # explicit budget (v7x-safe)
    )(x2, v2, r2, w_xh, w_sq, vec_slab, w_head, b_head)

    out = out.reshape(bs, nb, ts, 2 * dim_y)
    return out[..., :dim_y], out[..., dim_y:]


# ---------------- pure-JAX reference (unfused math, matches the PyTorch module) ----------------
def _ref_forward(X, v, r, params, *, n_layers, act_fn="relu", ln=False):
    bs, nb, ts, _ = X.shape
    H = params["wp"].shape[1]
    w = X @ params["wp"] + params["bp"] + params["emb"]
    v_rep = jnp.broadcast_to(v[:, :, None, :], (bs, nb, ts, H))
    h = jnp.concatenate([w, v_rep, r], axis=-1)
    for lp in params["layers"]:
        h = h @ lp["w"] + lp["b"]
        if ln:
            h = _layer_norm(h, lp["g"], lp["be"])
        h = _act(h, act_fn)
    mu = h @ params["wmu"] + params["bmu"]
    sigma = _SIGMA_EPS + (1.0 - _SIGMA_EPS) * _softplus(h @ params["wsig"] + params["bsig"])
    return mu, sigma


def _init_params(key, dim_x, dim_y, dim_hidden, n_layers, ln):
    def linear(k, din, dout):                       # PyTorch nn.Linear default init
        k1, k2 = jax.random.split(k)
        bound = 1.0 / np.sqrt(din)
        w = jax.random.uniform(k1, (din, dout), jnp.float32, -bound, bound)
        b = jax.random.uniform(k2, (1, dout), jnp.float32, -bound, bound)
        return w, b

    keys = iter(jax.random.split(key, 8 + 2 * n_layers))
    p = {}
    p["wp"], p["bp"] = linear(next(keys), dim_x, dim_hidden)
    p["emb"] = jax.random.normal(next(keys), (1, dim_hidden), jnp.float32)
    layers = []
    for l in range(n_layers - 1):
        din = 3 * dim_hidden if l == 0 else dim_hidden
        w, b = linear(next(keys), din, dim_hidden)
        lp = {"w": w, "b": b}
        if ln:
            lp["g"] = jnp.ones((1, dim_hidden), jnp.float32)
            lp["be"] = jnp.zeros((1, dim_hidden), jnp.float32)
        layers.append(lp)
    p["layers"] = layers
    p["wmu"], p["bmu"] = linear(next(keys), dim_hidden, dim_y)
    p["wsig"], p["bsig"] = linear(next(keys), dim_hidden, dim_y)
    return p


if __name__ == "__main__":
    key = jax.random.PRNGKey(0)
    bs, nb, ts = 4, 4, 8                    # batch, tasks, target points
    dim_x, dim_y, dim_hidden, n_layers = 16, 2, 32, 3
    act_fn, ln = "relu", True

    kx, kv, kr, kp = jax.random.split(key, 4)
    X = jax.random.normal(kx, (bs, nb, ts, dim_x), jnp.float32)
    v = jax.random.normal(kv, (bs, nb, dim_hidden), jnp.float32)
    r = jax.random.normal(kr, (bs, nb, ts, dim_hidden), jnp.float32)
    params = _init_params(kp, dim_x, dim_y, dim_hidden, n_layers, ln)

    mu, sigma = mtp_decoder_forward(X, v, r, params, n_layers=n_layers,
                                    act_fn=act_fn, ln=ln)
    mu, sigma = jax.block_until_ready((mu, sigma))
    assert mu.shape == (bs, nb, ts, dim_y) and sigma.shape == (bs, nb, ts, dim_y)

    mu_ref, sigma_ref = _ref_forward(X, v, r, params, n_layers=n_layers,
                                     act_fn=act_fn, ln=ln)
    np.testing.assert_allclose(np.asarray(mu), np.asarray(mu_ref), rtol=1e-4, atol=1e-4)
    np.testing.assert_allclose(np.asarray(sigma), np.asarray(sigma_ref), rtol=1e-4, atol=1e-4)
    print("KERNEL_OK")
</pallas_src>

<mosaic_0001>
module attributes {stable_mosaic.version = 11 : i64} {
  func.func @kernel(%arg0: i32, %arg1: memref<64x16xf32, #tpu.memory_space<vmem>>, %arg2: memref<8x32xf32, #tpu.memory_space<vmem>>, %arg3: memref<64x32xf32, #tpu.memory_space<vmem>>, %arg4: memref<16x32xf32, #tpu.memory_space<vmem>>, %arg5: memref<3x32x32xf32, #tpu.memory_space<vmem>>, %arg6: memref<6x32xf32, #tpu.memory_space<vmem>>, %arg7: memref<32x4xf32, #tpu.memory_space<vmem>>, %arg8: memref<1x4xf32, #tpu.memory_space<vmem>>, %arg9: memref<64x4xf32, #tpu.memory_space<vmem>>) attributes {dimension_semantics = [#tpu.dimension_semantics<parallel>], iteration_bounds = array<i64: 2>, scalar_prefetch = 0 : i64, scratch_operands = 0 : i64, tpu.core_type = #tpu.core_type<tc>, window_params = [{transform_indices = @transform_0, window_bounds = array<i64: 64, 16>}, {transform_indices = @transform_1, window_bounds = array<i64: 8, 32>}, {transform_indices = @transform_2, window_bounds = array<i64: 64, 32>}, {pipeline_mode = #tpu.pipeline_mode<synchronous>, transform_indices = @transform_3, window_bounds = array<i64: 16, 32>}, {pipeline_mode = #tpu.pipeline_mode<synchronous>, transform_indices = @transform_4, window_bounds = array<i64: 3, 32, 32>}, {pipeline_mode = #tpu.pipeline_mode<synchronous>, transform_indices = @transform_5, window_bounds = array<i64: 6, 32>}, {pipeline_mode = #tpu.pipeline_mode<synchronous>, transform_indices = @transform_6, window_bounds = array<i64: 32, 4>}, {pipeline_mode = #tpu.pipeline_mode<synchronous>, transform_indices = @transform_7, window_bounds = array<i64: 1, 4>}, {transform_indices = @transform_8, window_bounds = array<i64: 64, 4>}]} {
    %c0 = arith.constant 0 : index
    %c0_0 = arith.constant 0 : index
    %0 = vector.load %arg1[%c0, %c0_0] : memref<64x16xf32, #tpu.memory_space<vmem>>, vector<64x16xf32>
    %c0_1 = arith.constant 0 : index
    %c0_2 = arith.constant 0 : index
    %1 = vector.load %arg3[%c0_1, %c0_2] : memref<64x32xf32, #tpu.memory_space<vmem>>, vector<64x32xf32>
    %c0_3 = arith.constant 0 : index
    %c0_4 = arith.constant 0 : index
    %2 = vector.load %arg2[%c0_3, %c0_4] : memref<8x32xf32, #tpu.memory_space<vmem>>, vector<8x32xf32>
    %c0_5 = arith.constant 0 : index
    %c0_6 = arith.constant 0 : index
    %c0_7 = arith.constant 0 : index
    %3 = vector.load %arg5[%c0_5, %c0_6, %c0_7] : memref<3x32x32xf32, #tpu.memory_space<vmem>>, vector<1x32x32xf32>
    %4 = vector.shape_cast %3 : vector<1x32x32xf32> to vector<32x32xf32>
    %cst = arith.constant dense<0.000000e+00> : vector<8x32xf32>
    %5 = tpu.matmul %2, %4, %cst {dimension_numbers = #tpu.dot_dimension_numbers<[1], [0], [0], [1], [0, 0, 1, 1], [], []>} : vector<8x32xf32>, vector<32x32xf32>, vector<8x32xf32> -> vector<8x32xf32>
    %6 = vector.shape_cast %5 : vector<8x32xf32> to vector<8x1x32xf32>
    %7 = vector.shape_cast %6 : vector<8x1x32xf32> to vector<8x1x32xf32>
    %8 = vector.broadcast %7 : vector<8x1x32xf32> to vector<8x8x32xf32>
    %9 = vector.shape_cast %8 : vector<8x8x32xf32> to vector<64x32xf32>
    %c0_8 = arith.constant 0 : index
    %c0_9 = arith.constant 0 : index
    %10 = vector.load %arg4[%c0_8, %c0_9] : memref<16x32xf32, #tpu.memory_space<vmem>>, vector<16x32xf32>
    %cst_10 = arith.constant dense<0.000000e+00> : vector<64x32xf32>
    %11 = tpu.matmul %0, %10, %cst_10 {dimension_numbers = #tpu.dot_dimension_numbers<[1], [0], [0], [1], [0, 0, 1, 1], [], []>} : vector<64x16xf32>, vector<16x32xf32>, vector<64x32xf32> -> vector<64x32xf32>
    %c1 = arith.constant 1 : index
    %c0_11 = arith.constant 0 : index
    %c0_12 = arith.constant 0 : index
    %12 = vector.load %arg5[%c1, %c0_11, %c0_12] : memref<3x32x32xf32, #tpu.memory_space<vmem>>, vector<1x32x32xf32>
    %13 = vector.shape_cast %12 : vector<1x32x32xf32> to vector<32x32xf32>
    %cst_13 = arith.constant dense<0.000000e+00> : vector<64x32xf32>
    %14 = tpu.matmul %1, %13, %cst_13 {dimension_numbers = #tpu.dot_dimension_numbers<[1], [0], [0], [1], [0, 0, 1, 1], [], []>} : vector<64x32xf32>, vector<32x32xf32>, vector<64x32xf32> -> vector<64x32xf32>
    %15 = arith.addf %11, %14 : vector<64x32xf32>
    %16 = arith.addf %15, %9 : vector<64x32xf32>
    %c0_14 = arith.constant 0 : index
    %c0_15 = arith.constant 0 : index
    %17 = vector.load %arg6[%c0_14, %c0_15] : memref<6x32xf32, #tpu.memory_space<vmem>>, vector<1x32xf32>
    %18 = vector.broadcast %17 : vector<1x32xf32> to vector<64x32xf32>
    %19 = arith.addf %16, %18 : vector<64x32xf32>
    %c1_16 = arith.constant 1 : index
    %c0_17 = arith.constant 0 : index
    %20 = vector.load %arg6[%c1_16, %c0_17] : memref<6x32xf32, #tpu.memory_space<vmem>>, vector<1x32xf32>
    %c2 = arith.constant 2 : index
    %c0_18 = arith.constant 0 : index
    %21 = vector.load %arg6[%c2, %c0_18] : memref<6x32xf32, #tpu.memory_space<vmem>>, vector<1x32xf32>
    %cst_19 = arith.constant dense<0.000000e+00> : vector<64xf32>
    %22 = vector.multi_reduction <add>, %19, %cst_19 [1] : vector<64x32xf32> to vector<64xf32>
    %23 = vector.shape_cast %22 : vector<64xf32> to vector<64x1xf32>
    %cst_20 = arith.constant 3.200000e+01 : f32
    %24 = vector.broadcast %cst_20 : f32 to vector<64x1xf32>
    %25 = arith.divf %23, %24 : vector<64x1xf32>
    %26 = vector.broadcast %25 : vector<64x1xf32> to vector<64x32xf32>
    %27 = arith.subf %19, %26 : vector<64x32xf32>
    %28 = arith.mulf %27, %27 : vector<64x32xf32>
    %cst_21 = arith.constant dense<0.000000e+00> : vector<64xf32>
    %29 = vector.multi_reduction <add>, %28, %cst_21 [1] : vector<64x32xf32> to vector<64xf32>
    %30 = vector.shape_cast %29 : vector<64xf32> to vector<64x1xf32>
    %cst_22 = arith.constant 3.200000e+01 : f32
    %31 = vector.broadcast %cst_22 : f32 to vector<64x1xf32>
    %32 = arith.divf %30, %31 : vector<64x1xf32>
    %33 = vector.broadcast %25 : vector<64x1xf32> to vector<64x32xf32>
    %34 = arith.subf %19, %33 : vector<64x32xf32>
    %cst_23 = arith.constant 9.99999974E-6 : f32
    %35 = vector.broadcast %cst_23 : f32 to vector<64x1xf32>
    %36 = arith.addf %32, %35 : vector<64x1xf32>
    %37 = math.rsqrt %36 : vector<64x1xf32>
    %38 = vector.broadcast %37 : vector<64x1xf32> to vector<64x32xf32>
    %39 = arith.mulf %34, %38 : vector<64x32xf32>
    %40 = vector.broadcast %20 : vector<1x32xf32> to vector<64x32xf32>
    %41 = arith.mulf %39, %40 : vector<64x32xf32>
    %42 = vector.broadcast %21 : vector<1x32xf32> to vector<64x32xf32>
    %43 = arith.addf %41, %42 : vector<64x32xf32>
    %cst_24 = arith.constant 0.000000e+00 : f32
    %44 = vector.broadcast %cst_24 : f32 to vector<64x32xf32>
    %45 = arith.maximumf %43, %44 : vector<64x32xf32>
    %c2_25 = arith.constant 2 : index
    %c0_26 = arith.constant 0 : index
    %c0_27 = arith.constant 0 : index
    %46 = vector.load %arg5[%c2_25, %c0_26, %c0_27] : memref<3x32x32xf32, #tpu.memory_space<vmem>>, vector<1x32x32xf32>
    %47 = vector.shape_cast %46 : vector<1x32x32xf32> to vector<32x32xf32>
    %cst_28 = arith.constant dense<0.000000e+00> : vector<64x32xf32>
    %48 = tpu.matmul %45, %47, %cst_28 {dimension_numbers = #tpu.dot_dimension_numbers<[1], [0], [0], [1], [0, 0, 1, 1], [], []>} : vector<64x32xf32>, vector<32x32xf32>, vector<64x32xf32> -> vector<64x32xf32>
    %c3 = arith.constant 3 : index
    %c0_29 = arith.constant 0 : index
    %49 = vector.load %arg6[%c3, %c0_29] : memref<6x32xf32, #tpu.memory_space<vmem>>, vector<1x32xf32>
    %50 = vector.broadcast %49 : vector<1x32xf32> to vector<64x32xf32>
    %51 = arith.addf %48, %50 : vector<64x32xf32>
    %c4 = arith.constant 4 : index
    %c0_30 = arith.constant 0 : index
    %52 = vector.load %arg6[%c4, %c0_30] : memref<6x32xf32, #tpu.memory_space<vmem>>, vector<1x32xf32>
    %c5 = arith.constant 5 : index
    %c0_31 = arith.constant 0 : index
    %53 = vector.load %arg6[%c5, %c0_31] : memref<6x32xf32, #tpu.memory_space<vmem>>, vector<1x32xf32>
    %cst_32 = arith.constant dense<0.000000e+00> : vector<64xf32>
    %54 = vector.multi_reduction <add>, %51, %cst_32 [1] : vector<64x32xf32> to vector<64xf32>
    %55 = vector.shape_cast %54 : vector<64xf32> to vector<64x1xf32>
    %cst_33 = arith.constant 3.200000e+01 : f32
    %56 = vector.broadcast %cst_33 : f32 to vector<64x1xf32>
    %57 = arith.divf %55, %56 : vector<64x1xf32>
    %58 = vector.broadcast %57 : vector<64x1xf32> to vector<64x32xf32>
    %59 = arith.subf %51, %58 : vector<64x32xf32>
    %60 = arith.mulf %59, %59 : vector<64x32xf32>
    %cst_34 = arith.constant dense<0.000000e+00> : vector<64xf32>
    %61 = vector.multi_reduction <add>, %60, %cst_34 [1] : vector<64x32xf32> to vector<64xf32>
    %62 = vector.shape_cast %61 : vector<64xf32> to vector<64x1xf32>
    %cst_35 = arith.constant 3.200000e+01 : f32
    %63 = vector.broadcast %cst_35 : f32 to vector<64x1xf32>
    %64 = arith.divf %62, %63 : vector<64x1xf32>
    %65 = vector.broadcast %57 : vector<64x1xf32> to vector<64x32xf32>
    %66 = arith.subf %51, %65 : vector<64x32xf32>
    %cst_36 = arith.constant 9.99999974E-6 : f32
    %67 = vector.broadcast %cst_36 : f32 to vector<64x1xf32>
    %68 = arith.addf %64, %67 : vector<64x1xf32>
    %69 = math.rsqrt %68 : vector<64x1xf32>
    %70 = vector.broadcast %69 : vector<64x1xf32> to vector<64x32xf32>
    %71 = arith.mulf %66, %70 : vector<64x32xf32>
    %72 = vector.broadcast %52 : vector<1x32xf32> to vector<64x32xf32>
    %73 = arith.mulf %71, %72 : vector<64x32xf32>
    %74 = vector.broadcast %53 : vector<1x32xf32> to vector<64x32xf32>
    %75 = arith.addf %73, %74 : vector<64x32xf32>
    %cst_37 = arith.constant 0.000000e+00 : f32
    %76 = vector.broadcast %cst_37 : f32 to vector<64x32xf32>
    %77 = arith.maximumf %75, %76 : vector<64x32xf32>
    %c0_38 = arith.constant 0 : index
    %c0_39 = arith.constant 0 : index
    %78 = vector.load %arg7[%c0_38, %c0_39] : memref<32x4xf32, #tpu.memory_space<vmem>>, vector<32x4xf32>
    %cst_40 = arith.constant dense<0.000000e+00> : vector<64x4xf32>
    %79 = tpu.matmul %77, %78, %cst_40 {dimension_numbers = #tpu.dot_dimension_numbers<[1], [0], [0], [1], [0, 0, 1, 1], [], []>} : vector<64x32xf32>, vector<32x4xf32>, vector<64x4xf32> -> vector<64x4xf32>
    %c0_41 = arith.constant 0 : index
    %c0_42 = arith.constant 0 : index
    %80 = vector.load %arg8[%c0_41, %c0_42] : memref<1x4xf32, #tpu.memory_space<vmem>>, vector<1x4xf32>
    %81 = vector.broadcast %80 : vector<1x4xf32> to vector<64x4xf32>
    %82 = arith.addf %79, %81 : vector<64x4xf32>
    %83 = tpu.iota {dimensions = array<i32: 1>} : vector<64x4xi32>
    %cst_43 = arith.constant 0.000000e+00 : f32
    %84 = vector.broadcast %cst_43 : f32 to vector<64x4xf32>
    %85 = arith.maximumf %82, %84 : vector<64x4xf32>
    %86 = math.absf %82 : vector<64x4xf32>
    %cst_44 = arith.constant 0.000000e+00 : f32
    %87 = vector.broadcast %cst_44 : f32 to vector<64x4xf32>
    %88 = arith.subf %87, %86 : vector<64x4xf32>
    %89 = math.exp %88 : vector<64x4xf32>
    %cst_45 = arith.constant 1.000000e+00 : f32
    %90 = vector.broadcast %cst_45 : f32 to vector<64x4xf32>
    %91 = arith.addf %90, %89 : vector<64x4xf32>
    %92 = math.log %91 : vector<64x4xf32>
    %93 = arith.addf %85, %92 : vector<64x4xf32>
    %cst_46 = arith.constant 0.899999976 : f32
    %94 = vector.broadcast %cst_46 : f32 to vector<64x4xf32>
    %95 = arith.mulf %94, %93 : vector<64x4xf32>
    %cst_47 = arith.constant 1.000000e-01 : f32
    %96 = vector.broadcast %cst_47 : f32 to vector<64x4xf32>
    %97 = arith.addf %96, %95 : vector<64x4xf32>
    %c2_i32 = arith.constant 2 : i32
    %98 = vector.broadcast %c2_i32 : i32 to vector<64x4xi32>
    %99 = arith.cmpi slt, %83, %98 : vector<64x4xi32>
    %100 = arith.select %99, %82, %97 : vector<64x4xi1>, vector<64x4xf32>
    %c0_48 = arith.constant 0 : index
    %c0_49 = arith.constant 0 : index
    %101 = vector.load %arg9[%c0_48, %c0_49] : memref<64x4xf32, #tpu.memory_space<vmem>>, vector<64x4xf32>
    tpu.vector_store %arg9[%c0_48, %c0_49], %100 {strides = array<i32>} : memref<64x4xf32, #tpu.memory_space<vmem>>, vector<64x4xf32>,
    return
  }
  func.func @transform_0(%arg0: i32) -> (i32, i32) {
    %c0_i32 = arith.constant 0 : i32
    %c0_i32_0 = arith.constant 0 : i32
    return %arg0, %c0_i32 : i32, i32
  }
  func.func @transform_1(%arg0: i32) -> (i32, i32) {
    %c0_i32 = arith.constant 0 : i32
    %c0_i32_0 = arith.constant 0 : i32
    return %arg0, %c0_i32 : i32, i32
  }
  func.func @transform_2(%arg0: i32) -> (i32, i32) {
    %c0_i32 = arith.constant 0 : i32
    %c0_i32_0 = arith.constant 0 : i32
    return %arg0, %c0_i32 : i32, i32
  }
  func.func @transform_3(%arg0: i32) -> (i32, i32) {
    %c0_i32 = arith.constant 0 : i32
    %c0_i32_0 = arith.constant 0 : i32
    %c0_i32_1 = arith.constant 0 : i32
    return %c0_i32, %c0_i32_0 : i32, i32
  }
  func.func @transform_4(%arg0: i32) -> (i32, i32, i32) {
    %c0_i32 = arith.constant 0 : i32
    %c0_i32_0 = arith.constant 0 : i32
    %c0_i32_1 = arith.constant 0 : i32
    %c0_i32_2 = arith.constant 0 : i32
    return %c0_i32, %c0_i32_0, %c0_i32_1 : i32, i32, i32
  }
  func.func @transform_5(%arg0: i32) -> (i32, i32) {
    %c0_i32 = arith.constant 0 : i32
    %c0_i32_0 = arith.constant 0 : i32
    %c0_i32_1 = arith.constant 0 : i32
    return %c0_i32, %c0_i32_0 : i32, i32
  }
  func.func @transform_6(%arg0: i32) -> (i32, i32) {
    %c0_i32 = arith.constant 0 : i32
    %c0_i32_0 = arith.constant 0 : i32
    %c0_i32_1 = arith.constant 0 : i32
    return %c0_i32, %c0_i32_0 : i32, i32
  }
  func.func @transform_7(%arg0: i32) -> (i32, i32) {
    %c0_i32 = arith.constant 0 : i32
    %c0_i32_0 = arith.constant 0 : i32
    %c0_i32_1 = arith.constant 0 : i32
    return %c0_i32, %c0_i32_0 : i32, i32
  }
  func.func @transform_8(%arg0: i32) -> (i32, i32) {
    %c0_i32 = arith.constant 0 : i32
    %c0_i32_0 = arith.constant 0 : i32
    return %arg0, %c0_i32 : i32, i32
  }
}

</mosaic_0001>

<bundles_post_ra>
// kernel: tpu_custom_call.1
= control target key start
LH: loop header
LB: loop body
LE: loop exit
PB: predicated region body
PF: predicated region fallthrough
CT: control target
= control target key end

     0   :  { %s1512_s27 = smov 0   ;;  %s1951_s0 = inlined_call_operand.vmem [shape: f32[128,16], index: 0, kind: input, shape index: {}]   ;;  %s1952_s1 = inlined_call_operand.vmem [shape: f32[16,32], index: 1, kind: input, shape index: {}]   ;;  %s1953_s2 = inlined_call_operand.vmem [shape: f32[128,32], index: 2, kind: input, shape index: {}]   ;;  %s1954_s3 = inlined_call_operand.vmem [shape: f32[16,32], index: 3, kind: input, shape index: {}]   ;;  %s1955_s4 = inlined_call_operand.vmem [shape: f32[3,32,32], index: 4, kind: input, shape index: {}]   ;;  %s1956_s5 = inlined_call_operand.vmem [shape: f32[6,32], index: 5, kind: input, shape index: {}]   ;;  %s1957_s6 = inlined_call_operand.vmem [shape: f32[32,4], index: 6, kind: input, shape index: {}]   ;;  %s1958_s7 = inlined_call_operand.vmem [shape: f32[1,4], index: 7, kind: input, shape index: {}]   ;;  %s1959_s8 = inlined_call_operand.vmem [shape: f32[128,4], index: 8, kind: output, shape index: {}]  }
   0x1 LB: > { %s1321_s28 = sadd.s32 4294967295, %s1464_s27   ;;  %p1325_p0 = scmp.ge.s32.totalorder %s1464_s27, 1  ;;  %s1464_s27 = sphi %s1512_s27, %s18_s27  }
   0x2   : > { %p283_p1 = scmp.lt.s32.totalorder %s1464_s27, 3 }
   0x4   : > { %p284_p2 = pnand %p1325_p0, %p283_p1 }
   0x5   : > { %s1326_s13 = sshll.u32 (!%p284_p2), %s1321_s28, 3  ;;  %p332_p3 = scmp.lt.s32.totalorder (!%p284_p2), %s1321_s28, 1 }
   0x6   : > { %287 = sbr.rel (%p284_p2) target bundleno = 1120 (0x460), region = 52  ;;  %p327_p4 = scmp.lt.s32.totalorder (!%p284_p2), %s1326_s13, 15 }
   0xb   : > { %v418_v0 = vld [vmem:[%s1954_s3 + $0x8] sm:$0xff]  ;;  %v368_v1 = vld [vmem:[%s1955_s4 + $0x18] sm:$0xff]  ;;  %v417_v3 = vld [vmem:[%s1954_s3] sm:$0xff]  ;;  %vm489_vm0 = vcmask 130048   ;;  %s1961_s28 = smov (!%p332_p3, %s1321_s28), 1  ;;  %s1963_s13 = smov (!%p327_p4, %s1326_s13), 15 }
   0xc   : > { %v1337_v2 = vld [vmem:[%s1955_s4 + $0x38] sm:$0xff]  ;;  %528 = vmatpush.msra.mxu2 %v418_v0  ;;  %385 = vmatpush.msra.mxu0 %v368_v1  ;;  %v367_v4 = vld [vmem:[%s1955_s4 + $0x10] sm:$0xff]  ;;  %v366_v6 = vld [vmem:[%s1955_s4 + $0x8] sm:$0xff]  ;;  %s1328_s26 = sshll.u32 %s1961_s28, 3  ;;  %s1547_s29 = sshll.u32 %s1963_s13, 3  ;;  %vm369_vm1 = vcmask 261120  }
   0xd   : > { %v1336_v5 = vld [vmem:[%s1955_s4 + $0x30] sm:$0xff]  ;;  %460 = vmatpush.msra.mxu1 %v1337_v2  ;;  %v1335_v7 = vld [vmem:[%s1955_s4 + $0x28] sm:$0xff]  ;;  %v365_v8 = vld [vmem:[%s1955_s4] sm:$0xff]  ;;  %s335_s12 = scalar_lea.vmem %s1952_s1, %s1328_s26  ;;  %s1559_s16 = scalar_lea.vmem %s1951_s0, %s1547_s29 }
   0xe   : > { %529 = vmatpush.msra.mxu2 %v417_v3  ;;  %386 = vmatpush.msra.mxu0 %v367_v4  ;;  %v1334_v9 = vld [vmem:[%s1955_s4 + $0x20] sm:$0xff]  ;;  %s1566_s17 = scalar_lea.vmem %s1953_s2, %s1547_s29  ;;  %v349_v13 = vld [vmem:[%s1559_s16 + $0x8] sm:$0xff]  ;;  %v350_v15 = vld [vmem:[%s1559_s16 + $0x10] sm:$0xff]  ;;  %s1906_s11 = scalar_lea.vmem %s1959_s8, %s1547_s29 }
   0xf   : > { %461 = vmatpush.msra.mxu1 %v1336_v5  ;;  %v364_v10 = vld [vmem:[%s335_s12] sm:$0xff]  ;;  %v357_v14 = vld [vmem:[%s1566_s17 + $0x8] sm:$0xff]  ;;  %v358_v16 = vld [vmem:[%s1566_s17 + $0x10] sm:$0xff] }
  0x10   : > { %387 = vmatpush.msra.mxu0 %v366_v6  ;;  %v348_v11 = vld [vmem:[%s1559_s16] sm:$0xff]  ;;  %v351_v17 = vld [vmem:[%s1559_s16 + $0x18] sm:$0xff]  ;;  %v353_v21 = vld [vmem:[%s1559_s16 + $0x28] sm:$0xff] }
  0x11   : > { %462 = vmatpush.msra.mxu1 %v1335_v7  ;;  %1346 = vmatmul.msk.f32.vlgmr.msra.gmra.mxu2 %vm489_vm0, %v348_v11  ;;  %v356_v12 = vld [vmem:[%s1566_s17] sm:$0xff]  ;;  %v359_v18 = vld [vmem:[%s1566_s17 + $0x18] sm:$0xff]  ;;  %v361_v22 = vld [vmem:[%s1566_s17 + $0x28] sm:$0xff] }
  0x12   : > { %388 = vmatpush.msra.mxu0 %v365_v8  ;;  %v352_v19 = vld [vmem:[%s1559_s16 + $0x20] sm:$0xff]  ;;  %v354_v23 = vld [vmem:[%s1559_s16 + $0x30] sm:$0xff]  ;;  %v355_v25 = vld [vmem:[%s1559_s16 + $0x38] sm:$0xff] }
  0x13   : > { %463 = vmatpush.msra.mxu1 %v1334_v9  ;;  %1333 = vmatmul.msk.f32.vlgmr.msra.gmra.mxu0 %vm369_vm1, %v364_v10  ;;  %v360_v20 = vld [vmem:[%s1566_s17 + $0x20] sm:$0xff]  ;;  %v362_v24 = vld [vmem:[%s1566_s17 + $0x30] sm:$0xff]  ;;  %v363_v26 = vld [vmem:[%s1566_s17 + $0x38] sm:$0xff] }
  0x14   : > { %1338 = vmatmul.msk.f32.vlgmr.msra.gmra.mxu1 %vm369_vm1, %v356_v12  ;;  %v1606_v32 = vld [vmem:[%s1956_s5] ss:$0 sm:$0xff] }
  0x19   : > { %1347 = vmatmul.msk.f32.gmra.mxu2 %vm489_vm0, %v349_v13 }
  0x1c   : > { %1339 = vmatmul.msk.f32.gmra.mxu1 %vm369_vm1, %v357_v14 }
  0x21   : > { %1348 = vmatmul.msk.f32.gmra.mxu2 %vm489_vm0, %v350_v15 }
  0x24   : > { %1340 = vmatmul.msk.f32.gmra.mxu1 %vm369_vm1, %v358_v16 }
  0x29   : > { %1349 = vmatmul.msk.f32.gmra.mxu2 %vm489_vm0, %v351_v17 }
  0x2c   : > { %1341 = vmatmul.msk.f32.gmra.mxu1 %vm369_vm1, %v359_v18 }
  0x31   : > { %1350 = vmatmul.msk.f32.gmra.mxu2 %vm489_vm0, %v352_v19 }
  0x34   : > { %1342 = vmatmul.msk.f32.gmra.mxu1 %vm369_vm1, %v360_v20  ;;  %v1466_v20 = vmov 32.0  }
  0x35   : > { %1392 = vrcp.f32 %v1466_v20 }
  0x39   : > { %1351 = vmatmul.msk.f32.gmra.mxu2 %vm489_vm0, %v353_v21 }
  0x3b   : > { %v1393_v21 = vpop.eup %1392 }
  0x3c   : > { %1343 = vmatmul.msk.f32.gmra.mxu1 %vm369_vm1, %v361_v22  ;;  %v600_v22 = vmul.f32 32.0, %v1393_v21  ;;  %vm604_vm2 = vweird.f32 %v1393_v21 }
  0x41   : > { %1352 = vmatmul.msk.f32.gmra.mxu2 %vm489_vm0, %v354_v23  ;;  %v601_v23 = vsub.f32 1.0, %v600_v22 }
  0x44   : > { %1344 = vmatmul.msk.f32.gmra.mxu1 %vm369_vm1, %v362_v24  ;;  %v602_v24 = vmul.f32 %v1393_v21, %v601_v23 }
  0x49   : > { %1353 = vmatmul.msk.f32.gmra.mxu2 %vm489_vm0, %v355_v25  ;;  %v603_v25 = vadd.f32 %v1393_v21, %v602_v24 }
  0x4c   : > { %1345 = vmatmul.msk.f32.gmra.mxu1 %vm369_vm1, %v363_v26  ;;  %v1643_v26 = vsel %vm604_vm2, %v1393_v21, %v603_v25 }
  0x90   : > { %v1600_v28 = vpop.f32.mrf.mxu0 }
  0x91   : > { %v465_v27 = vpop.f32.mrf.mxu1  ;;  %v401_v29 = vperm.slane %v1600_v28, 0  ;;  %v394_v35 = vrot.slane %v1600_v28, 1  ;;  %v395_v43 = vrot.slane %v1600_v28, 2  ;;  %v396_v51 = vrot.slane %v1600_v28, 3 }
  0x92   : > { %v397_v59 = vrot.slane %v1600_v28, 4  ;;  %v398_v3 = vrot.slane %v1600_v28, 5  ;;  %v399_v10 = vrot.slane %v1600_v28, 6 }
  0x93   : > { %v402_v39 = vperm.slane %v394_v35, 0  ;;  %v403_v47 = vperm.slane %v395_v43, 0  ;;  %v404_v55 = vperm.slane %v396_v51, 0 }
  0x94   : > { %v531_v30 = vpop.f32.mrf.mxu2  ;;  %v405_v63 = vperm.slane %v397_v59, 0  ;;  %v406_v7 = vperm.slane %v398_v3, 0  ;;  %v407_v15 = vperm.slane %v399_v10, 0 }
  0x95   : > { %v532_v31 = vadd.f32 %v531_v30, %v465_v27 }
  0x97   : > { %v555_v33 = vadd.f32 %v532_v31, %v401_v29  ;;  %v400_v31 = vrot.slane %v1600_v28, 7 }
  0x99   : > { %v468_v34 = vpop.f32.mrf.mxu1  ;;  %v1610_v36 = vadd.f32 %v1606_v32, %v555_v33 }
  0x9b   : > { %v575_v37 = vsel %vm369_vm1, %v1610_v36, 0.0 }
  0x9c   : > { %v534_v38 = vpop.f32.mrf.mxu2  ;;  %576 = vadd.xlane.f32.xlu0 %v575_v37  ;;  %v408_v37 = vperm.slane %v400_v31, 0 }
  0x9d   : > { %v535_v40 = vadd.f32 %v534_v38, %v468_v34 }
  0x9f   : > { %v556_v41 = vadd.f32 %v535_v40, %v402_v39 }
  0xa1   : > { %v471_v42 = vpop.f32.mrf.mxu1  ;;  %v1616_v44 = vadd.f32 %v1606_v32, %v556_v41 }
  0xa3   : > { %v578_v45 = vsel %vm369_vm1, %v1616_v44, 0.0 }
  0xa4   : > { %v537_v46 = vpop.f32.mrf.mxu2  ;;  %579 = vadd.xlane.f32.xlu0 %v578_v45 }
  0xa5   : > { %v538_v48 = vadd.f32 %v537_v46, %v471_v42 }
  0xa7   : > { %v557_v49 = vadd.f32 %v538_v48, %v403_v47 }
  0xa9   : > { %v474_v50 = vpop.f32.mrf.mxu1  ;;  %v1622_v52 = vadd.f32 %v1606_v32, %v557_v49 }
  0xab   : > { %v581_v53 = vsel %vm369_vm1, %v1622_v52, 0.0 }
  0xac   : > { %v540_v54 = vpop.f32.mrf.mxu2  ;;  %582 = vadd.xlane.f32.xlu1 %v581_v53 }
  0xad   : > { %v541_v56 = vadd.f32 %v540_v54, %v474_v50 }
  0xaf   : > { %v558_v57 = vadd.f32 %v541_v56, %v404_v55 }
  0xb1   : > { %v477_v58 = vpop.f32.mrf.mxu1  ;;  %v1628_v60 = vadd.f32 %v1606_v32, %v558_v57 }
  0xb3   : > { %v584_v61 = vsel %vm369_vm1, %v1628_v60, 0.0 }
  0xb4   : > { %v543_v62 = vpop.f32.mrf.mxu2  ;;  %585 = vadd.xlane.f32.xlu1 %v584_v61 }
  0xb5   : > { %v544_v0 = vadd.f32 %v543_v62, %v477_v58 }
  0xb7   : > { %v559_v1 = vadd.f32 %v544_v0, %v405_v63 }
  0xb9   : > { %v480_v2 = vpop.f32.mrf.mxu1  ;;  %v1634_v4 = vadd.f32 %v1606_v32, %v559_v1 }
  0xbb   : > { %v587_v5 = vsel %vm369_vm1, %v1634_v4, 0.0 }
  0xbc   : > { %v546_v6 = vpop.f32.mrf.mxu2  ;;  %588 = vadd.xlane.f32.xlu2 %v587_v5 }
  0xbd   : > { %v547_v8 = vadd.f32 %v546_v6, %v480_v2  ;;  %v1357_v6 = vld [vmem:[%s1955_s4 + $0x58] sm:$0xff] }
  0xbe   : > { %827 = vmatpush.msra.mxu3 %v1357_v6 }
  0xbf   : > { %v560_v9 = vadd.f32 %v547_v8, %v406_v7  ;;  %v1356_v7 = vld [vmem:[%s1955_s4 + $0x50] sm:$0xff]  ;;  %v1355_v8 = vld [vmem:[%s1955_s4 + $0x48] sm:$0xff] }
  0xc0   : > { %828 = vmatpush.msra.mxu3 %v1356_v7 }
  0xc1   : > { %v570_v11 = vadd.f32 %v1606_v32, %v560_v9  ;;  %v483_v12 = vpop.f32.mrf.mxu1  ;;  %v1354_v9 = vld [vmem:[%s1955_s4 + $0x40] sm:$0xff] }
  0xc2   : > { %829 = vmatpush.msra.mxu3 %v1355_v8 }
  0xc3   : > { %v590_v13 = vsel %vm369_vm1, %v570_v11, 0.0 }
  0xc4   : > { %v549_v14 = vpop.f32.mrf.mxu2  ;;  %591 = vadd.xlane.f32.xlu2 %v590_v13  ;;  %830 = vmatpush.msra.mxu3 %v1354_v9 }
  0xc5   : > { %v550_v16 = vadd.f32 %v549_v14, %v483_v12 }
  0xc7   : > { %v561_v17 = vadd.f32 %v550_v16, %v407_v15 }
  0xc9   : > { %v571_v18 = vadd.f32 %v1606_v32, %v561_v17  ;;  %v486_v27 = vpop.f32.mrf.mxu1 }
  0xcb   : > { %v593_v19 = vsel %vm369_vm1, %v571_v18, 0.0 }
  0xcc   : > { %594 = vadd.xlane.f32.xlu1 %v593_v19  ;;  %v552_v29 = vpop.f32.mrf.mxu2 }
  0xcd   : > { %v553_v34 = vadd.f32 %v552_v29, %v486_v27 }
  0xcf   : > { %v562_v39 = vadd.f32 %v553_v34, %v408_v37  ;;  %v1719_v37 = vld [vmem:[%s1956_s5 + $0x1] ss:$0 sm:$0xff] }
  0xd1   : > { %v572_v28 = vadd.f32 %v1606_v32, %v562_v39 }
  0xd3   : > { %v596_v45 = vsel %vm369_vm1, %v572_v28, 0.0 }
 0x10f   : > { %v577_v30 = vpop.xlane.xlu0 %576 }
 0x110   : > { %v606_v33 = vmul.f32 %v1643_v26, %v577_v30 }
 0x112   : > { %v1648_v35 = vsub.f32 %v1610_v36, %v606_v33 }
 0x114   : > { %v622_v38 = vmul.f32 %v1648_v35, %v1648_v35 }
 0x116   : > { %v630_v40 = vsel %vm369_vm1, %v622_v38, 0.0 }
 0x117   : > { %631 = vadd.xlane.f32.xlu0 %v630_v40  ;;  %v580_v41 = vpop.xlane.xlu0 %579 }
 0x118   : > { %v607_v42 = vmul.f32 %v1643_v26, %v580_v41  ;;  %v1725_v41 = vld [vmem:[%s1956_s5 + $0x2] ss:$0 sm:$0xff] }
 0x11a   : > { %v1655_v43 = vsub.f32 %v1616_v44, %v607_v42 }
 0x11c   : > { %v623_v36 = vmul.f32 %v1655_v43, %v1655_v43 }
 0x11e   : > { %v633_v46 = vsel %vm369_vm1, %v623_v36, 0.0 }
 0x11f   : > { %v583_v47 = vpop.xlane.xlu1 %582  ;;  %597 = vadd.xlane.f32.xlu0 %v596_v45  ;;  %634 = vadd.xlane.f32.xlu2 %v633_v46 }
 0x120   : > { %v608_v48 = vmul.f32 %v1643_v26, %v583_v47 }
 0x122   : > { %v1664_v49 = vsub.f32 %v1622_v52, %v608_v48 }
 0x124   : > { %v624_v44 = vmul.f32 %v1664_v49, %v1664_v49 }
 0x126   : > { %v636_v32 = vsel %vm369_vm1, %v624_v44, 0.0 }
 0x127   : > { %637 = vadd.xlane.f32.xlu1 %v636_v32  ;;  %v586_v50 = vpop.xlane.xlu1 %585 }
 0x128   : > { %v609_v51 = vmul.f32 %v1643_v26, %v586_v50 }
 0x12a   : > { %v1671_v53 = vsub.f32 %v1628_v60, %v609_v51 }
 0x12c   : > { %v625_v54 = vmul.f32 %v1671_v53, %v1671_v53 }
 0x12e   : > { %v639_v55 = vsel %vm369_vm1, %v625_v54, 0.0 }
 0x12f   : > { %v589_v56 = vpop.xlane.xlu2 %588  ;;  %640 = vadd.xlane.f32.xlu2 %v639_v55 }
 0x130   : > { %v610_v52 = vmul.f32 %v1643_v26, %v589_v56 }
 0x132   : > { %v1678_v57 = vsub.f32 %v1634_v4, %v610_v52 }
 0x134   : > { %v626_v58 = vmul.f32 %v1678_v57, %v1678_v57 }
 0x136   : > { %v642_v59 = vsel %vm369_vm1, %v626_v58, 0.0 }
 0x137   : > { %v592_v61 = vpop.xlane.xlu2 %591  ;;  %643 = vadd.xlane.f32.xlu0 %v642_v59 }
 0x138   : > { %v611_v60 = vmul.f32 %v1643_v26, %v592_v61 }
 0x13a   : > { %v1684_v62 = vsub.f32 %v570_v11, %v611_v60 }
 0x13c   : > { %v627_v63 = vmul.f32 %v1684_v62, %v1684_v62 }
 0x13e   : > { %v645_v0 = vsel %vm369_vm1, %v627_v63, 0.0 }
 0x13f   : > { %646 = vadd.xlane.f32.xlu1 %v645_v0  ;;  %v595_v1 = vpop.xlane.xlu1 %594 }
 0x140   : > { %v612_v2 = vmul.f32 %v1643_v26, %v595_v1 }
 0x142   : > { %v1690_v3 = vsub.f32 %v571_v18, %v612_v2 }
 0x144   : > { %v628_v4 = vmul.f32 %v1690_v3, %v1690_v3 }
 0x146   : > { %v648_v5 = vsel %vm369_vm1, %v628_v4, 0.0 }
 0x147   : > { %649 = vadd.xlane.f32.xlu2 %v648_v5 }
 0x18a   : > { %v632_v10 = vpop.xlane.xlu0 %631 }
 0x18b   : > { %v654_v11 = vmul.f32 %v632_v10, %v1643_v26 }
 0x18d   : > { %v662_v12 = vadd.f32 1e-05, %v654_v11 }
 0x18f   : > { %1394 = vrsqrt.f32 %v662_v12  ;;  %vm676_vm4 = vweird.f32 %v662_v12 }
 0x192   : > { %v635_v13 = vpop.xlane.xlu2 %634  ;;  %v598_v14 = vpop.xlane.xlu0 %597 }
 0x193   : > { %v655_v15 = vmul.f32 %v635_v13, %v1643_v26  ;;  %v613_v16 = vmul.f32 %v1643_v26, %v598_v14 }
 0x195   : > { %v1395_v17 = vpop.eup %1394  ;;  %v663_v18 = vadd.f32 1e-05, %v655_v15  ;;  %v1710_v19 = vsub.f32 %v572_v28, %v613_v16 }
 0x196   : > { %v671_v20 = vmul.f32 %v1395_v17, %v662_v12  ;;  %vm677_vm3 = vweird.f32 %v1395_v17 }
 0x197   : > { %1396 = vrsqrt.f32 %v663_v18  ;;  %v629_v21 = vmul.f32 %v1710_v19, %v1710_v19  ;;  %vm678_vm5 = vmor %vm676_vm4, %vm677_vm3  ;;  %vm686_vm7 = vweird.f32 %v663_v18 }
 0x198   : > { %v672_v22 = vmul.f32 %v1395_v17, %v671_v20 }
 0x199   : > { %v651_v23 = vsel %vm369_vm1, %v629_v21, 0.0 }
 0x19a   : > { %v673_v24 = vmul.f32 0.5, %v672_v22  ;;  %v638_v25 = vpop.xlane.xlu1 %637  ;;  %652 = vadd.xlane.f32.xlu0 %v651_v23 }
 0x19b   : > { %v656_v27 = vmul.f32 %v638_v25, %v1643_v26 }
 0x19c   : > { %v674_v29 = vsub.f32 1.5, %v673_v24 }
 0x19d   : > { %v1397_v30 = vpop.eup %1396  ;;  %v664_v31 = vadd.f32 1e-05, %v656_v27 }
 0x19e   : > { %v675_v33 = vmul.f32 %v1395_v17, %v674_v29  ;;  %v681_v34 = vmul.f32 %v1397_v30, %v663_v18  ;;  %vm687_vm6 = vweird.f32 %v1397_v30 }
 0x19f   : > { %1398 = vrsqrt.f32 %v664_v31  ;;  %vm688_vm8 = vmor %vm686_vm7, %vm687_vm6  ;;  %vm696_vm10 = vweird.f32 %v664_v31 }
 0x1a0   : > { %v679_v38 = vsel %vm678_vm5, %v1395_v17, %v675_v33  ;;  %v682_v39 = vmul.f32 %v1397_v30, %v681_v34 }
 0x1a1   : > { %v750_v40 = vmul.f32 %v679_v38, %v1648_v35 }
 0x1a2   : > { %v683_v42 = vmul.f32 0.5, %v682_v39  ;;  %v641_v28 = vpop.xlane.xlu2 %640 }
 0x1a3   : > { %v657_v36 = vmul.f32 %v641_v28, %v1643_v26  ;;  %v759_v45 = vmul.f32 %v1719_v37, %v750_v40 }
 0x1a4   : > { %v684_v46 = vsub.f32 1.5, %v683_v42 }
 0x1a5   : > { %v1399_v47 = vpop.eup %1398  ;;  %v665_v48 = vadd.f32 1e-05, %v657_v36  ;;  %v768_v44 = vadd.f32 %v1725_v41, %v759_v45 }
 0x1a6   : > { %v685_v32 = vmul.f32 %v1397_v30, %v684_v46  ;;  %v691_v35 = vmul.f32 %v1399_v47, %v664_v31  ;;  %vm697_vm9 = vweird.f32 %v1399_v47 }
 0x1a7   : > { %1400 = vrsqrt.f32 %v665_v48  ;;  %v776_v50 = vmax.f32 %v768_v44, 0.0  ;;  %vm698_vm11 = vmor %vm696_vm10, %vm697_vm9  ;;  %vm706_vm13 = vweird.f32 %v665_v48 }
 0x1a8   : > { %v689_v51 = vsel %vm688_vm8, %v1397_v30, %v685_v32  ;;  %v692_v54 = vmul.f32 %v1399_v47, %v691_v35 }
 0x1a9   : > { %1358 = vmatmul.msk.f32.vlgmr.msra.gmra.mxu3 %vm369_vm1, %v776_v50  ;;  %v751_v55 = vmul.f32 %v689_v51, %v1655_v43 }
 0x1aa   : > { %v693_v56 = vmul.f32 0.5, %v692_v54  ;;  %v644_v52 = vpop.xlane.xlu0 %643 }
 0x1ab   : > { %v658_v58 = vmul.f32 %v644_v52, %v1643_v26  ;;  %v760_v59 = vmul.f32 %v1719_v37, %v751_v55 }
 0x1ac   : > { %v694_v61 = vsub.f32 1.5, %v693_v56 }
 0x1ad   : > { %v1401_v60 = vpop.eup %1400  ;;  %v666_v63 = vadd.f32 1e-05, %v658_v58  ;;  %v769_v0 = vadd.f32 %v1725_v41, %v760_v59 }
 0x1ae   : > { %v695_v1 = vmul.f32 %v1399_v47, %v694_v61  ;;  %v701_v2 = vmul.f32 %v1401_v60, %v665_v48  ;;  %vm707_vm12 = vweird.f32 %v1401_v60 }
 0x1af   : > { %1402 = vrsqrt.f32 %v666_v63  ;;  %v777_v4 = vmax.f32 %v769_v0, 0.0  ;;  %vm708_vm14 = vmor %vm706_vm13, %vm707_vm12  ;;  %vm716_vm0 = vweird.f32 %v666_v63 }
 0x1b0   : > { %v699_v5 = vsel %vm698_vm11, %v1399_v47, %v695_v1  ;;  %v702_v43 = vmul.f32 %v1401_v60, %v701_v2 }
 0x1b1   : > { %1359 = vmatmul.msk.f32.gmra.mxu3 %vm369_vm1, %v777_v4  ;;  %v752_v6 = vmul.f32 %v699_v5, %v1664_v49 }
 0x1b2   : > { %v703_v7 = vmul.f32 0.5, %v702_v43  ;;  %v647_v8 = vpop.xlane.xlu1 %646 }
 0x1b3   : > { %v659_v9 = vmul.f32 %v647_v8, %v1643_v26  ;;  %v761_v10 = vmul.f32 %v1719_v37, %v752_v6 }
 0x1b4   : > { %v704_v11 = vsub.f32 1.5, %v703_v7 }
 0x1b5   : > { %v1403_v12 = vpop.eup %1402  ;;  %v667_v13 = vadd.f32 1e-05, %v659_v9  ;;  %v770_v14 = vadd.f32 %v1725_v41, %v761_v10  ;;  %v1388_v10 = vld [vmem:[%s1956_s5 + $0x3] ss:$0 sm:$0xff] }
 0x1b6   : > { %v705_v15 = vmul.f32 %v1401_v60, %v704_v11  ;;  %v711_v16 = vmul.f32 %v1403_v12, %v666_v63  ;;  %vm717_vm15 = vweird.f32 %v1403_v12 }
 0x1b7   : > { %1404 = vrsqrt.f32 %v667_v13  ;;  %v778_v17 = vmax.f32 %v770_v14, 0.0  ;;  %vm718_vm2 = vmor %vm716_vm0, %vm717_vm15  ;;  %vm726_vm4 = vweird.f32 %v667_v13 }
 0x1b8   : > { %v709_v18 = vsel %vm708_vm14, %v1401_v60, %v705_v15  ;;  %v712_v49 = vmul.f32 %v1403_v12, %v711_v16 }
 0x1b9   : > { %1360 = vmatmul.msk.f32.gmra.mxu3 %vm369_vm1, %v778_v17  ;;  %v753_v20 = vmul.f32 %v709_v18, %v1671_v53 }
 0x1ba   : > { %v713_v21 = vmul.f32 0.5, %v712_v49  ;;  %v650_v22 = vpop.xlane.xlu2 %649 }
 0x1bb   : > { %v660_v23 = vmul.f32 %v650_v22, %v1643_v26  ;;  %v762_v24 = vmul.f32 %v1719_v37, %v753_v20 }
 0x1bc   : > { %v714_v25 = vsub.f32 1.5, %v713_v21 }
 0x1bd   : > { %v1405_v27 = vpop.eup %1404  ;;  %v668_v29 = vadd.f32 1e-05, %v660_v23  ;;  %v771_v30 = vadd.f32 %v1725_v41, %v762_v24 }
 0x1be   : > { %v715_v31 = vmul.f32 %v1403_v12, %v714_v25  ;;  %v721_v33 = vmul.f32 %v1405_v27, %v667_v13  ;;  %vm727_vm3 = vweird.f32 %v1405_v27 }
 0x1bf   : > { %1406 = vrsqrt.f32 %v668_v29  ;;  %v779_v34 = vmax.f32 %v771_v30, 0.0  ;;  %vm728_vm5 = vmor %vm726_vm4, %vm727_vm3  ;;  %vm736_vm7 = vweird.f32 %v668_v29 }
 0x1c0   : > { %v719_v38 = vsel %vm718_vm2, %v1403_v12, %v715_v31  ;;  %v722_v53 = vmul.f32 %v1405_v27, %v721_v33 }
 0x1c1   : > { %1361 = vmatmul.msk.f32.gmra.mxu3 %vm369_vm1, %v779_v34  ;;  %v754_v39 = vmul.f32 %v719_v38, %v1678_v57 }
 0x1c2   : > { %v723_v40 = vmul.f32 0.5, %v722_v53 }
 0x1c3   : > { %v763_v42 = vmul.f32 %v1719_v37, %v754_v39 }
 0x1c4   : > { %v724_v28 = vsub.f32 1.5, %v723_v40 }
 0x1c5   : > { %v1407_v36 = vpop.eup %1406  ;;  %v772_v45 = vadd.f32 %v1725_v41, %v763_v42 }
 0x1c6   : > { %v725_v46 = vmul.f32 %v1405_v27, %v724_v28  ;;  %v731_v47 = vmul.f32 %v1407_v36, %v668_v29  ;;  %vm737_vm6 = vweird.f32 %v1407_v36 }
 0x1c7   : > { %v780_v48 = vmax.f32 %v772_v45, 0.0  ;;  %vm738_vm8 = vmor %vm736_vm7, %vm737_vm6 }
 0x1c8   : > { %v729_v44 = vsel %vm728_vm5, %v1405_v27, %v725_v46  ;;  %v732_v32 = vmul.f32 %v1407_v36, %v731_v47 }
 0x1c9   : > { %1362 = vmatmul.msk.f32.gmra.mxu3 %vm369_vm1, %v780_v48  ;;  %v755_v35 = vmul.f32 %v729_v44, %v1684_v62 }
 0x1ca   : > { %v733_v57 = vmul.f32 0.5, %v732_v32 }
 0x1cb   : > { %v764_v50 = vmul.f32 %v1719_v37, %v755_v35 }
 0x1cc   : > { %v734_v51 = vsub.f32 1.5, %v733_v57 }
 0x1cd   : > { %v773_v54 = vadd.f32 %v1725_v41, %v764_v50 }
 0x1ce   : > { %v735_v55 = vmul.f32 %v1407_v36, %v734_v51 }
 0x1cf   : > { %v781_v56 = vmax.f32 %v773_v54, 0.0 }
 0x1d0   : > { %v739_v52 = vsel %vm738_vm8, %v1407_v36, %v735_v55 }
 0x1d1   : > { %1363 = vmatmul.msk.f32.gmra.mxu3 %vm369_vm1, %v781_v56  ;;  %v756_v58 = vmul.f32 %v739_v52, %v1690_v3 }
 0x1d3   : > { %v765_v59 = vmul.f32 %v1719_v37, %v756_v58 }
 0x1d5   : > { %v774_v62 = vadd.f32 %v1725_v41, %v765_v59 }
 0x1d7   : > { %v782_v61 = vmax.f32 %v774_v62, 0.0 }
 0x1d9   : > { %1364 = vmatmul.msk.f32.gmra.mxu3 %vm369_vm1, %v782_v61 }
 0x20d   : > { %v653_v60 = vpop.xlane.xlu0 %652 }
 0x20e   : > { %v661_v63 = vmul.f32 %v653_v60, %v1643_v26 }
 0x210   : > { %v669_v0 = vadd.f32 1e-05, %v661_v63 }
 0x212   : > { %1408 = vrsqrt.f32 %v669_v0  ;;  %vm746_vm10 = vweird.f32 %v669_v0 }
 0x218   : > { %v1409_v1 = vpop.eup %1408 }
 0x219   : > { %v741_v2 = vmul.f32 %v1409_v1, %v669_v0  ;;  %vm747_vm9 = vweird.f32 %v1409_v1 }
 0x21a   : > { %vm748_vm11 = vmor %vm746_vm10, %vm747_vm9 }
 0x21b   : > { %v742_v4 = vmul.f32 %v1409_v1, %v741_v2 }
 0x21d   : > { %v743_v5 = vmul.f32 0.5, %v742_v4 }
 0x21f   : > { %v744_v43 = vsub.f32 1.5, %v743_v5 }
 0x221   : > { %v745_v6 = vmul.f32 %v1409_v1, %v744_v43 }
 0x223   : > { %v749_v3 = vsel %vm748_vm11, %v1409_v1, %v745_v6 }
 0x224   : > { %v757_v7 = vmul.f32 %v749_v3, %v1710_v19 }
 0x226   : > { %v766_v8 = vmul.f32 %v1719_v37, %v757_v7 }
 0x228   : > { %v775_v9 = vadd.f32 %v1725_v41, %v766_v8  ;;  %v1063_v8 = vld [vmem:[%s1957_s6 + $0x18] sm:$0xff] }
 0x229   : > { %1104 = vmatpush.msrb.mxu0 %v1063_v8 }
 0x22a   : > { %v783_v11 = vmax.f32 %v775_v9, 0.0  ;;  %v1062_v9 = vld [vmem:[%s1957_s6 + $0x10] sm:$0xff] }
 0x22b   : > { %1105 = vmatpush.msrb.mxu0 %v1062_v9 }
 0x22c   : > { %v832_v12 = vpop.f32.mrf.mxu3  ;;  %1365 = vmatmul.msk.f32.gmra.mxu3 %vm369_vm1, %v783_v11  ;;  %v1060_v11 = vld [vmem:[%s1957_s6] sm:$0xff] }
 0x22d   : > { %v833_v13 = vadd.f32 %v1388_v10, %v832_v12 }
 0x22f   : > { %v858_v14 = vsel %vm369_vm1, %v833_v13, 0.0 }
 0x230   : > { %859 = vadd.xlane.f32.xlu1 %v858_v14 }
 0x234   : > { %v835_v15 = vpop.f32.mrf.mxu3 }
 0x235   : > { %v836_v16 = vadd.f32 %v1388_v10, %v835_v15 }
 0x237   : > { %v861_v19 = vsel %vm369_vm1, %v836_v16, 0.0 }
 0x238   : > { %862 = vadd.xlane.f32.xlu2 %v861_v19 }
 0x23c   : > { %v838_v37 = vpop.f32.mrf.mxu3 }
 0x23d   : > { %v839_v17 = vadd.f32 %v1388_v10, %v838_v37 }
 0x23f   : > { %v864_v41 = vsel %vm369_vm1, %v839_v17, 0.0 }
 0x240   : > { %865 = vadd.xlane.f32.xlu0 %v864_v41 }
 0x244   : > { %v841_v18 = vpop.f32.mrf.mxu3 }
 0x245   : > { %v842_v49 = vadd.f32 %v1388_v10, %v841_v18 }
 0x247   : > { %v867_v20 = vsel %vm369_vm1, %v842_v49, 0.0 }
 0x248   : > { %868 = vadd.xlane.f32.xlu1 %v867_v20 }
 0x24c   : > { %v844_v21 = vpop.f32.mrf.mxu3 }
 0x24d   : > { %v845_v22 = vadd.f32 %v1388_v10, %v844_v21 }
 0x24f   : > { %v870_v23 = vsel %vm369_vm1, %v845_v22, 0.0 }
 0x250   : > { %871 = vadd.xlane.f32.xlu2 %v870_v23 }
 0x254   : > { %v847_v24 = vpop.f32.mrf.mxu3 }
 0x255   : > { %v848_v25 = vadd.f32 %v1388_v10, %v847_v24 }
 0x257   : > { %v873_v27 = vsel %vm369_vm1, %v848_v25, 0.0 }
 0x258   : > { %874 = vadd.xlane.f32.xlu0 %v873_v27 }
 0x25c   : > { %v850_v29 = vpop.f32.mrf.mxu3 }
 0x25d   : > { %v851_v30 = vadd.f32 %v1388_v10, %v850_v29 }
 0x25f   : > { %v876_v31 = vsel %vm369_vm1, %v851_v30, 0.0 }
 0x260   : > { %877 = vadd.xlane.f32.xlu2 %v876_v31 }
 0x2a3   : > { %v860_v33 = vpop.xlane.xlu1 %859 }
 0x2a4   : > { %v882_v34 = vmul.f32 %v860_v33, %v1643_v26 }
 0x2a6   : > { %v1774_v38 = vsub.f32 %v833_v13, %v882_v34  ;;  %v1840_v34 = vld [vmem:[%s1956_s5 + $0x4] ss:$0 sm:$0xff] }
 0x2a8   : > { %v898_v53 = vmul.f32 %v1774_v38, %v1774_v38 }
 0x2aa   : > { %v906_v39 = vsel %vm369_vm1, %v898_v53, 0.0 }
 0x2ab   : > { %v863_v40 = vpop.xlane.xlu2 %862  ;;  %907 = vadd.xlane.f32.xlu1 %v906_v39 }
 0x2ac   : > { %v883_v42 = vmul.f32 %v863_v40, %v1643_v26 }
 0x2ae   : > { %v1780_v28 = vsub.f32 %v836_v16, %v883_v42  ;;  %v1846_v42 = vld [vmem:[%s1956_s5 + $0x5] ss:$0 sm:$0xff] }
 0x2af   : > { %v853_v36 = vpop.f32.mrf.mxu3 }
 0x2b0   : > { %v854_v45 = vadd.f32 %v1388_v10, %v853_v36  ;;  %v899_v46 = vmul.f32 %v1780_v28, %v1780_v28  ;;  %v1061_v10 = vld [vmem:[%s1957_s6 + $0x8] sm:$0xff] }
 0x2b1   : > { %1106 = vmatpush.msrb.mxu0 %v1061_v10 }
 0x2b2   : > { %v909_v47 = vsel %vm369_vm1, %v899_v46, 0.0  ;;  %v879_v48 = vsel %vm369_vm1, %v854_v45, 0.0 }
 0x2b3   : > { %910 = vadd.xlane.f32.xlu0 %v909_v47  ;;  %880 = vadd.xlane.f32.xlu1 %v879_v48  ;;  %v866_v44 = vpop.xlane.xlu0 %865 }
 0x2b4   : > { %v884_v32 = vmul.f32 %v866_v44, %v1643_v26  ;;  %1107 = vmatpush.msrb.mxu0 %v1060_v11 }
 0x2b6   : > { %v1787_v35 = vsub.f32 %v839_v17, %v884_v32 }
 0x2b8   : > { %v900_v57 = vmul.f32 %v1787_v35, %v1787_v35 }
 0x2ba   : > { %v912_v50 = vsel %vm369_vm1, %v900_v57, 0.0 }
 0x2bb   : > { %v869_v51 = vpop.xlane.xlu1 %868  ;;  %913 = vadd.xlane.f32.xlu2 %v912_v50 }
 0x2bc   : > { %v885_v54 = vmul.f32 %v869_v51, %v1643_v26 }
 0x2be   : > { %v1793_v55 = vsub.f32 %v842_v49, %v885_v54 }
 0x2c0   : > { %v901_v56 = vmul.f32 %v1793_v55, %v1793_v55 }
 0x2c2   : > { %v915_v52 = vsel %vm369_vm1, %v901_v56, 0.0 }
 0x2c3   : > { %916 = vadd.xlane.f32.xlu0 %v915_v52  ;;  %v872_v58 = vpop.xlane.xlu2 %871 }
 0x2c4   : > { %v886_v59 = vmul.f32 %v872_v58, %v1643_v26 }
 0x2c6   : > { %v1799_v62 = vsub.f32 %v845_v22, %v886_v59 }
 0x2c8   : > { %v902_v61 = vmul.f32 %v1799_v62, %v1799_v62 }
 0x2ca   : > { %v918_v60 = vsel %vm369_vm1, %v902_v61, 0.0 }
 0x2cb   : > { %919 = vadd.xlane.f32.xlu1 %v918_v60  ;;  %v875_v63 = vpop.xlane.xlu0 %874 }
 0x2cc   : > { %v887_v0 = vmul.f32 %v875_v63, %v1643_v26 }
 0x2ce   : > { %v1805_v1 = vsub.f32 %v848_v25, %v887_v0 }
 0x2d0   : > { %v903_v2 = vmul.f32 %v1805_v1, %v1805_v1 }
 0x2d2   : > { %v921_v4 = vsel %vm369_vm1, %v903_v2, 0.0 }
 0x2d3   : > { %v878_v5 = vpop.xlane.xlu2 %877  ;;  %922 = vadd.xlane.f32.xlu2 %v921_v4 }
 0x2d4   : > { %v888_v43 = vmul.f32 %v878_v5, %v1643_v26 }
 0x2d6   : > { %v1811_v6 = vsub.f32 %v851_v30, %v888_v43 }
 0x2d8   : > { %v904_v3 = vmul.f32 %v1811_v6, %v1811_v6 }
 0x2da   : > { %v924_v7 = vsel %vm369_vm1, %v904_v3, 0.0 }
 0x2db   : > { %925 = vadd.xlane.f32.xlu0 %v924_v7 }
 0x31e   : > { %v908_v12 = vpop.xlane.xlu1 %907 }
 0x31f   : > { %v930_v13 = vmul.f32 %v908_v12, %v1643_v26 }
 0x321   : > { %v938_v14 = vadd.f32 1e-05, %v930_v13 }
 0x323   : > { %1410 = vrsqrt.f32 %v938_v14  ;;  %vm952_vm13 = vweird.f32 %v938_v14 }
 0x326   : > { %v881_v15 = vpop.xlane.xlu1 %880  ;;  %v911_v16 = vpop.xlane.xlu0 %910 }
 0x327   : > { %v889_v19 = vmul.f32 %v881_v15, %v1643_v26  ;;  %v931_v37 = vmul.f32 %v911_v16, %v1643_v26 }
 0x329   : > { %v1411_v17 = vpop.eup %1410  ;;  %v1831_v41 = vsub.f32 %v854_v45, %v889_v19  ;;  %v939_v18 = vadd.f32 1e-05, %v931_v37 }
 0x32a   : > { %v947_v49 = vmul.f32 %v1411_v17, %v938_v14  ;;  %vm953_vm12 = vweird.f32 %v1411_v17 }
 0x32b   : > { %1412 = vrsqrt.f32 %v939_v18  ;;  %v905_v20 = vmul.f32 %v1831_v41, %v1831_v41  ;;  %vm954_vm14 = vmor %vm952_vm13, %vm953_vm12  ;;  %vm962_vm0 = vweird.f32 %v939_v18 }
 0x32c   : > { %v948_v21 = vmul.f32 %v1411_v17, %v947_v49 }
 0x32d   : > { %v927_v22 = vsel %vm369_vm1, %v905_v20, 0.0 }
 0x32e   : > { %v949_v23 = vmul.f32 0.5, %v948_v21  ;;  %928 = vadd.xlane.f32.xlu1 %v927_v22  ;;  %v914_v24 = vpop.xlane.xlu2 %913 }
 0x32f   : > { %v932_v25 = vmul.f32 %v914_v24, %v1643_v26 }
 0x330   : > { %v950_v27 = vsub.f32 1.5, %v949_v23 }
 0x331   : > { %v1413_v29 = vpop.eup %1412  ;;  %v940_v30 = vadd.f32 1e-05, %v932_v25 }
 0x332   : > { %v951_v31 = vmul.f32 %v1411_v17, %v950_v27  ;;  %v957_v33 = vmul.f32 %v1413_v29, %v939_v18  ;;  %vm963_vm15 = vweird.f32 %v1413_v29 }
 0x333   : > { %1414 = vrsqrt.f32 %v940_v30  ;;  %vm964_vm2 = vmor %vm962_vm0, %vm963_vm15  ;;  %vm972_vm4 = vweird.f32 %v940_v30 }
 0x334   : > { %v955_v53 = vsel %vm954_vm14, %v1411_v17, %v951_v31  ;;  %v958_v39 = vmul.f32 %v1413_v29, %v957_v33 }
 0x335   : > { %v1026_v40 = vmul.f32 %v955_v53, %v1774_v38 }
 0x336   : > { %v959_v36 = vmul.f32 0.5, %v958_v39  ;;  %v917_v45 = vpop.xlane.xlu0 %916 }
 0x337   : > { %v933_v46 = vmul.f32 %v917_v45, %v1643_v26  ;;  %v1035_v47 = vmul.f32 %v1840_v34, %v1026_v40 }
 0x338   : > { %v960_v48 = vsub.f32 1.5, %v959_v36 }
 0x339   : > { %v1415_v44 = vpop.eup %1414  ;;  %v941_v32 = vadd.f32 1e-05, %v933_v46  ;;  %v1044_v57 = vadd.f32 %v1846_v42, %v1035_v47 }
 0x33a   : > { %v961_v50 = vmul.f32 %v1413_v29, %v960_v48  ;;  %v967_v38 = vmul.f32 %v1415_v44, %v940_v30  ;;  %vm973_vm3 = vweird.f32 %v1415_v44 }
 0x33b   : > { %1416 = vrsqrt.f32 %v941_v32  ;;  %v1052_v51 = vmax.f32 %v1044_v57, 0.0  ;;  %vm974_vm5 = vmor %vm972_vm4, %vm973_vm3  ;;  %vm982_vm7 = vweird.f32 %v941_v32 }
 0x33c   : > { %v965_v54 = vsel %vm964_vm2, %v1413_v29, %v961_v50  ;;  %v968_v56 = vmul.f32 %v1415_v44, %v967_v38 }
 0x33d   : > { %1366 = vmatmul.msk.f32.vlgmr.msrb.gmra.mxu0 %vm369_vm1, %v1052_v51  ;;  %v1027_v52 = vmul.f32 %v965_v54, %v1780_v28 }
 0x33e   : > { %v969_v58 = vmul.f32 0.5, %v968_v56  ;;  %v920_v59 = vpop.xlane.xlu1 %919 }
 0x33f   : > { %v934_v61 = vmul.f32 %v920_v59, %v1643_v26  ;;  %v1036_v60 = vmul.f32 %v1840_v34, %v1027_v52 }
 0x340   : > { %v970_v63 = vsub.f32 1.5, %v969_v58 }
 0x341   : > { %v1417_v0 = vpop.eup %1416  ;;  %v942_v2 = vadd.f32 1e-05, %v934_v61  ;;  %v1045_v4 = vadd.f32 %v1846_v42, %v1036_v60 }
 0x342   : > { %v971_v5 = vmul.f32 %v1415_v44, %v970_v63  ;;  %v977_v43 = vmul.f32 %v1417_v0, %v941_v32  ;;  %vm983_vm6 = vweird.f32 %v1417_v0 }
 0x343   : > { %1418 = vrsqrt.f32 %v942_v2  ;;  %v1053_v3 = vmax.f32 %v1045_v4, 0.0  ;;  %vm984_vm8 = vmor %vm982_vm7, %vm983_vm6  ;;  %vm992_vm10 = vweird.f32 %v942_v2  ;;  %vm1232_vm6 = vcmask 31744  }
 0x344   : > { %v975_v7 = vsel %vm974_vm5, %v1415_v44, %v971_v5  ;;  %v978_v28 = vmul.f32 %v1417_v0, %v977_v43 }
 0x345   : > { %1367 = vmatmul.msk.f32.gmra.mxu0 %vm369_vm1, %v1053_v3  ;;  %v1028_v8 = vmul.f32 %v975_v7, %v1787_v35 }
 0x346   : > { %v979_v9 = vmul.f32 0.5, %v978_v28  ;;  %v923_v10 = vpop.xlane.xlu2 %922 }
 0x347   : > { %v935_v11 = vmul.f32 %v923_v10, %v1643_v26  ;;  %v1037_v12 = vmul.f32 %v1840_v34, %v1028_v8 }
 0x348   : > { %v980_v13 = vsub.f32 1.5, %v979_v9  ;;  %v1883_v9 = vld [vmem:[%s1958_s7] ss:$0 sm:$0xff] }
 0x349   : > { %v1419_v14 = vpop.eup %1418  ;;  %v943_v15 = vadd.f32 1e-05, %v935_v11  ;;  %v1046_v16 = vadd.f32 %v1846_v42, %v1037_v12 }
 0x34a   : > { %v981_v19 = vmul.f32 %v1417_v0, %v980_v13  ;;  %v987_v37 = vmul.f32 %v1419_v14, %v942_v2  ;;  %vm993_vm9 = vweird.f32 %v1419_v14 }
 0x34b   : > { %1420 = vrsqrt.f32 %v943_v15  ;;  %v1054_v17 = vmax.f32 %v1046_v16, 0.0  ;;  %vm994_vm11 = vmor %vm992_vm10, %vm993_vm9  ;;  %vm1002_vm13 = vweird.f32 %v943_v15 }
 0x34c   : > { %v985_v18 = vsel %vm984_vm8, %v1417_v0, %v981_v19  ;;  %v988_v35 = vmul.f32 %v1419_v14, %v987_v37 }
 0x34d   : > { %1368 = vmatmul.msk.f32.gmra.mxu0 %vm369_vm1, %v1054_v17  ;;  %v1029_v49 = vmul.f32 %v985_v18, %v1793_v55 }
 0x34e   : > { %v989_v20 = vmul.f32 0.5, %v988_v35  ;;  %v926_v21 = vpop.xlane.xlu0 %925 }
 0x34f   : > { %v936_v22 = vmul.f32 %v926_v21, %v1643_v26  ;;  %v1038_v23 = vmul.f32 %v1840_v34, %v1029_v49 }
 0x350   : > { %v990_v24 = vsub.f32 1.5, %v989_v20 }
 0x351   : > { %v1421_v25 = vpop.eup %1420  ;;  %v944_v27 = vadd.f32 1e-05, %v936_v22  ;;  %v1047_v29 = vadd.f32 %v1846_v42, %v1038_v23  ;;  %v1133_v23 = vlaneseq }
 0x352   : > { %v991_v30 = vmul.f32 %v1419_v14, %v990_v24  ;;  %v997_v31 = vmul.f32 %v1421_v25, %v943_v15  ;;  %vm1003_vm12 = vweird.f32 %v1421_v25 }
 0x353   : > { %1422 = vrsqrt.f32 %v944_v27  ;;  %v1055_v33 = vmax.f32 %v1047_v29, 0.0  ;;  %vm1004_vm14 = vmor %vm1002_vm13, %vm1003_vm12  ;;  %vm1012_vm0 = vweird.f32 %v944_v27 }
 0x354   : > { %v995_v53 = vsel %vm994_vm11, %v1419_v14, %v991_v30  ;;  %v998_v55 = vmul.f32 %v1421_v25, %v997_v31 }
 0x355   : > { %1369 = vmatmul.msk.f32.gmra.mxu0 %vm369_vm1, %v1055_v33  ;;  %v1030_v39 = vmul.f32 %v995_v53, %v1799_v62 }
 0x356   : > { %v999_v40 = vmul.f32 0.5, %v998_v55  ;;  %v1898_v55 = vand.u32 127, %v1133_v23 }
 0x357   : > { %v1039_v36 = vmul.f32 %v1840_v34, %v1030_v39 }
 0x358   : > { %v1000_v45 = vsub.f32 1.5, %v999_v40 }
 0x359   : > { %v1423_v46 = vpop.eup %1422  ;;  %v1048_v47 = vadd.f32 %v1846_v42, %v1039_v36 }
 0x35a   : > { %v1001_v48 = vmul.f32 %v1421_v25, %v1000_v45  ;;  %v1007_v44 = vmul.f32 %v1423_v46, %v944_v27  ;;  %vm1013_vm15 = vweird.f32 %v1423_v46 }
 0x35b   : > { %v1056_v32 = vmax.f32 %v1048_v47, 0.0  ;;  %vm1014_vm2 = vmor %vm1012_vm0, %vm1013_vm15 }
 0x35c   : > { %v1005_v57 = vsel %vm1004_vm14, %v1421_v25, %v1001_v48  ;;  %v1008_v50 = vmul.f32 %v1423_v46, %v1007_v44 }
 0x35d   : > { %1370 = vmatmul.msk.f32.gmra.mxu0 %vm369_vm1, %v1056_v32  ;;  %v1031_v38 = vmul.f32 %v1005_v57, %v1805_v1 }
 0x35e   : > { %v1009_v62 = vmul.f32 0.5, %v1008_v50 }
 0x35f   : > { %v1040_v51 = vmul.f32 %v1840_v34, %v1031_v38 }
 0x360   : > { %v1010_v54 = vsub.f32 1.5, %v1009_v62 }
 0x361   : > { %v1049_v56 = vadd.f32 %v1846_v42, %v1040_v51 }
 0x362   : > { %v1011_v52 = vmul.f32 %v1423_v46, %v1010_v54 }
 0x363   : > { %v1057_v58 = vmax.f32 %v1049_v56, 0.0 }
 0x364   : > { %v1015_v59 = vsel %vm1014_vm2, %v1423_v46, %v1011_v52 }
 0x365   : > { %1371 = vmatmul.msk.f32.gmra.mxu0 %vm369_vm1, %v1057_v58  ;;  %v1032_v61 = vmul.f32 %v1015_v59, %v1811_v6 }
 0x367   : > { %v1041_v60 = vmul.f32 %v1840_v34, %v1032_v61 }
 0x369   : > { %v1050_v1 = vadd.f32 %v1846_v42, %v1041_v60 }
 0x36b   : > { %v1058_v63 = vmax.f32 %v1050_v1, 0.0 }
 0x36d   : > { %1372 = vmatmul.msk.f32.gmra.mxu0 %vm369_vm1, %v1058_v63 }
 0x3a1   : > { %v929_v0 = vpop.xlane.xlu1 %928 }
 0x3a2   : > { %v937_v2 = vmul.f32 %v929_v0, %v1643_v26 }
 0x3a4   : > { %v945_v4 = vadd.f32 1e-05, %v937_v2 }
 0x3a6   : > { %1424 = vrsqrt.f32 %v945_v4  ;;  %vm1022_vm4 = vweird.f32 %v945_v4 }
 0x3ac   : > { %v1425_v5 = vpop.eup %1424 }
 0x3ad   : > { %v1017_v43 = vmul.f32 %v1425_v5, %v945_v4  ;;  %vm1023_vm3 = vweird.f32 %v1425_v5 }
 0x3ae   : > { %vm1024_vm5 = vmor %vm1022_vm4, %vm1023_vm3 }
 0x3af   : > { %v1018_v3 = vmul.f32 %v1425_v5, %v1017_v43 }
 0x3b1   : > { %v1019_v7 = vmul.f32 0.5, %v1018_v3 }
 0x3b3   : > { %v1020_v28 = vsub.f32 1.5, %v1019_v7 }
 0x3b5   : > { %v1021_v8 = vmul.f32 %v1425_v5, %v1020_v28 }
 0x3b7   : > { %v1025_v6 = vsel %vm1024_vm5, %v1425_v5, %v1021_v8 }
 0x3b8   : > { %v1033_v10 = vmul.f32 %v1025_v6, %v1831_v41 }
 0x3ba   : > { %v1109_v26 = vpop.f32.mrf.mxu0  ;;  %v1042_v11 = vmul.f32 %v1840_v34, %v1033_v10 }
 0x3bb   : > { %v1110_v12 = vadd.f32 %v1883_v9, %v1109_v26 }
 0x3bc   : > { %v1051_v13 = vadd.f32 %v1846_v42, %v1042_v11 }
 0x3bd   : > { %v1143_v14 = vand.u32 2147483647, %v1110_v12  ;;  %v1135_v31 = vmax.f32 %v1110_v12, 0.0 }
 0x3be   : > { %v1059_v15 = vmax.f32 %v1051_v13, 0.0 }
 0x3bf   : > { %v1151_v16 = vsub.f32 0.0, %v1143_v14 }
 0x3c0   : > { %1373 = vmatmul.msk.f32.gmra.mxu0 %vm369_vm1, %v1059_v15  ;;  %vm1223_vm1 = vcmp.lt.s32.totalorder %v1898_v55, 2 }
 0x3c1   : > { %v1159_v19 = vmul.f32 1.442695, %v1151_v16 }
 0x3c2   : > { %v1112_v37 = vpop.f32.mrf.mxu0 }
 0x3c3   : > { %1426 = vpow2.f32 %v1159_v19  ;;  %v1113_v17 = vadd.f32 %v1883_v9, %v1112_v37 }
 0x3c5   : > { %v1144_v18 = vand.u32 2147483647, %v1113_v17  ;;  %v1136_v32 = vmax.f32 %v1113_v17, 0.0 }
 0x3c7   : > { %v1152_v35 = vsub.f32 0.0, %v1144_v18 }
 0x3c9   : > { %v1427_v41 = vpop.eup %1426  ;;  %v1161_v49 = vmul.f32 1.442695, %v1152_v35 }
 0x3ca   : > { %v1175_v20 = vadd.f32 1.0, %v1427_v41  ;;  %v1115_v34 = vpop.f32.mrf.mxu0 }
 0x3cb   : > { %1428 = vpow2.f32 %v1161_v49  ;;  %v1892_v21 = vadd.f32 %v1883_v9, %v1115_v34 }
 0x3cc   : > { %1430 = vlog2.f32 %v1175_v20 }
 0x3cd   : > { %v1145_v42 = vand.u32 2147483647, %v1892_v21  ;;  %v1137_v63 = vmax.f32 %v1892_v21, 0.0 }
 0x3cf   : > { %v1153_v22 = vsub.f32 0.0, %v1145_v42 }
 0x3d1   : > { %v1429_v24 = vpop.eup %1428  ;;  %v1163_v25 = vmul.f32 1.442695, %v1153_v22 }
 0x3d2   : > { %v1431_v27 = vpop.eup %1430  ;;  %v1176_v29 = vadd.f32 1.0, %v1429_v24  ;;  %v1118_v30 = vpop.f32.mrf.mxu0 }
 0x3d3   : > { %v1184_v33 = vmul.f32 0.6931472, %v1431_v27  ;;  %1432 = vpow2.f32 %v1163_v25  ;;  %v1896_v53 = vadd.f32 %v1883_v9, %v1118_v30 }
 0x3d4   : > { %1434 = vlog2.f32 %v1176_v29 }
 0x3d5   : > { %v1199_v39 = vadd.f32 %v1184_v33, %v1135_v31  ;;  %v1146_v40 = vand.u32 2147483647, %v1896_v53 }
 0x3d7   : > { %v1207_v36 = vmul.f32 0.9, %v1199_v39  ;;  %v1154_v45 = vsub.f32 0.0, %v1146_v40 }
 0x3d9   : > { %v1433_v46 = vpop.eup %1432  ;;  %v1215_v47 = vadd.f32 0.1, %v1207_v36  ;;  %v1165_v48 = vmul.f32 1.442695, %v1154_v45 }
 0x3da   : > { %v1435_v44 = vpop.eup %1434  ;;  %v1177_v57 = vadd.f32 1.0, %v1433_v46  ;;  %v1121_v50 = vpop.f32.mrf.mxu0 }
 0x3db   : > { %v1224_v38 = vsel %vm1223_vm1, %v1110_v12, %v1215_v47  ;;  %v1186_v62 = vmul.f32 0.6931472, %v1435_v44  ;;  %1436 = vpow2.f32 %v1165_v48  ;;  %v1122_v51 = vadd.f32 %v1883_v9, %v1121_v50 }
 0x3dc   : > { %1233 = vst.msk [vmem:[%s1906_s11] sm:$0xff] %vm1232_vm6, %v1224_v38  ;;  %1438 = vlog2.f32 %v1177_v57  ;;  %v1138_v12 = vmax.f32 %v1896_v53, 0.0 }
 0x3dd   : > { %v1200_v54 = vadd.f32 %v1186_v62, %v1136_v32  ;;  %v1147_v56 = vand.u32 2147483647, %v1122_v51  ;;  %v1139_v22 = vmax.f32 %v1122_v51, 0.0 }
 0x3df   : > { %v1208_v52 = vmul.f32 0.9, %v1200_v54  ;;  %v1155_v58 = vsub.f32 0.0, %v1147_v56 }
 0x3e1   : > { %v1437_v59 = vpop.eup %1436  ;;  %v1216_v61 = vadd.f32 0.1, %v1208_v52  ;;  %v1167_v60 = vmul.f32 1.442695, %v1155_v58 }
 0x3e2   : > { %v1439_v1 = vpop.eup %1438  ;;  %v1178_v0 = vadd.f32 1.0, %v1437_v59  ;;  %v1124_v2 = vpop.f32.mrf.mxu0 }
 0x3e3   : > { %v1225_v4 = vsel %vm1223_vm1, %v1113_v17, %v1216_v61  ;;  %v1188_v5 = vmul.f32 0.6931472, %v1439_v1  ;;  %1440 = vpow2.f32 %v1167_v60  ;;  %v1125_v43 = vadd.f32 %v1883_v9, %v1124_v2 }
 0x3e4   : > { %1234 = vst.msk [vmem:[%s1906_s11 + $0x8] sm:$0xff] %vm1232_vm6, %v1225_v4  ;;  %1442 = vlog2.f32 %v1178_v0 }
 0x3e5   : > { %v1201_v3 = vadd.f32 %v1188_v5, %v1137_v63  ;;  %v1148_v7 = vand.u32 2147483647, %v1125_v43  ;;  %v1140_v39 = vmax.f32 %v1125_v43, 0.0 }
 0x3e7   : > { %v1209_v28 = vmul.f32 0.9, %v1201_v3  ;;  %v1156_v8 = vsub.f32 0.0, %v1148_v7 }
 0x3e9   : > { %v1441_v6 = vpop.eup %1440  ;;  %v1217_v10 = vadd.f32 0.1, %v1209_v28  ;;  %v1169_v26 = vmul.f32 1.442695, %v1156_v8 }
 0x3ea   : > { %v1443_v11 = vpop.eup %1442  ;;  %v1179_v13 = vadd.f32 1.0, %v1441_v6  ;;  %v1127_v14 = vpop.f32.mrf.mxu0 }
 0x3eb   : > { %v1226_v15 = vsel %vm1223_vm1, %v1892_v21, %v1217_v10  ;;  %v1190_v16 = vmul.f32 0.6931472, %v1443_v11  ;;  %1444 = vpow2.f32 %v1169_v26  ;;  %v1128_v19 = vadd.f32 %v1883_v9, %v1127_v14 }
 0x3ec   : > { %1235 = vst.msk [vmem:[%s1906_s11 + $0x10] sm:$0xff] %vm1232_vm6, %v1226_v15  ;;  %1446 = vlog2.f32 %v1179_v13 }
 0x3ed   : > { %v1202_v37 = vadd.f32 %v1190_v16, %v1138_v12  ;;  %v1149_v17 = vand.u32 2147483647, %v1128_v19  ;;  %v1141_v48 = vmax.f32 %v1128_v19, 0.0 }
 0x3ef   : > { %v1210_v18 = vmul.f32 0.9, %v1202_v37  ;;  %v1157_v35 = vsub.f32 0.0, %v1149_v17 }
 0x3f1   : > { %v1445_v41 = vpop.eup %1444  ;;  %v1218_v49 = vadd.f32 0.1, %v1210_v18  ;;  %v1171_v20 = vmul.f32 1.442695, %v1157_v35 }
 0x3f2   : > { %v1447_v34 = vpop.eup %1446  ;;  %v1180_v42 = vadd.f32 1.0, %v1445_v41 }
 0x3f3   : > { %v1227_v21 = vsel %vm1223_vm1, %v1896_v53, %v1218_v49  ;;  %v1192_v23 = vmul.f32 0.6931472, %v1447_v34  ;;  %1448 = vpow2.f32 %v1171_v20 }
 0x3f4   : > { %1236 = vst.msk [vmem:[%s1906_s11 + $0x18] sm:$0xff] %vm1232_vm6, %v1227_v21  ;;  %1450 = vlog2.f32 %v1180_v42 }
 0x3f5   : > { %v1203_v24 = vadd.f32 %v1192_v23, %v1139_v22 }
 0x3f7   : > { %v1211_v25 = vmul.f32 0.9, %v1203_v24 }
 0x3f9   : > { %v1449_v27 = vpop.eup %1448  ;;  %v1219_v29 = vadd.f32 0.1, %v1211_v25 }
 0x3fa   : > { %v1451_v30 = vpop.eup %1450  ;;  %v1181_v31 = vadd.f32 1.0, %v1449_v27 }
 0x3fb   : > { %v1228_v33 = vsel %vm1223_vm1, %v1122_v51, %v1219_v29  ;;  %v1194_v40 = vmul.f32 0.6931472, %v1451_v30 }
 0x3fc   : > { %1237 = vst.msk [vmem:[%s1906_s11 + $0x20] sm:$0xff] %vm1232_vm6, %v1228_v33  ;;  %1452 = vlog2.f32 %v1181_v31 }
 0x3fd   : > { %v1204_v53 = vadd.f32 %v1194_v40, %v1140_v39 }
 0x3ff   : > { %v1212_v36 = vmul.f32 0.9, %v1204_v53 }
 0x401   : > { %v1220_v45 = vadd.f32 0.1, %v1212_v36 }
 0x402   : > { %v1453_v46 = vpop.eup %1452 }
 0x403   : > { %v1229_v47 = vsel %vm1223_vm1, %v1125_v43, %v1220_v45  ;;  %v1196_v44 = vmul.f32 0.6931472, %v1453_v46 }
 0x404   : > { %1238 = vst.msk [vmem:[%s1906_s11 + $0x28] sm:$0xff] %vm1232_vm6, %v1229_v47 }
 0x405   : > { %v1205_v32 = vadd.f32 %v1196_v44, %v1141_v48 }
 0x407   : > { %v1213_v57 = vmul.f32 0.9, %v1205_v32 }
 0x409   : > { %v1221_v50 = vadd.f32 0.1, %v1213_v57 }
 0x40b   : > { %v1230_v38 = vsel %vm1223_vm1, %v1128_v19, %v1221_v50 }
 0x40c   : > { %1239 = vst.msk [vmem:[%s1906_s11 + $0x30] sm:$0xff] %vm1232_vm6, %v1230_v38 }
 0x43d   : > { %v1130_v62 = vpop.f32.mrf.mxu0 }
 0x43e   : > { %v1131_v51 = vadd.f32 %v1883_v9, %v1130_v62 }
 0x440   : > { %v1150_v54 = vand.u32 2147483647, %v1131_v51  ;;  %v1142_v60 = vmax.f32 %v1131_v51, 0.0 }
 0x442   : > { %v1158_v56 = vsub.f32 0.0, %v1150_v54 }
 0x444   : > { %v1173_v52 = vmul.f32 1.442695, %v1158_v56 }
 0x446   : > { %1454 = vpow2.f32 %v1173_v52 }
 0x44c   : > { %v1455_v58 = vpop.eup %1454 }
 0x44d   : > { %v1182_v59 = vadd.f32 1.0, %v1455_v58 }
 0x44f   : > { %1456 = vlog2.f32 %v1182_v59 }
 0x455   : > { %v1457_v61 = vpop.eup %1456 }
 0x456   : > { %v1198_v1 = vmul.f32 0.6931472, %v1457_v61 }
 0x458   : > { %v1206_v63 = vadd.f32 %v1198_v1, %v1142_v60 }
 0x45a   : > { %v1214_v0 = vmul.f32 0.9, %v1206_v63 }
 0x45c   : > { %v1222_v2 = vadd.f32 0.1, %v1214_v0 }
 0x45e   : > { %v1231_v4 = vsel %vm1223_vm1, %v1131_v51, %v1222_v2 }
 0x45f   : > { %1240 = vst.msk [vmem:[%s1906_s11 + $0x38] sm:$0xff] %vm1232_vm6, %v1231_v4 }
 0x460 PF: > { %s18_s27 = sadd.s32 1, %s1464_s27  }
 0x461   : > { %p15_p5 = scmp.ge.s32.totalorder %s18_s27, 4  }
 0x463   :  { %17 = sbr.rel (!%p15_p5) target bundleno = 1 (0x1), region = 90 }

</bundles_post_ra>
